<compile_context>
chip_gen: v5e
topology: v5e:2x2
jax: 0.10.0
libtpu: 0.0.40
codegen_flags: <defaults>
</compile_context>

<pallas_src>
import functools

import jax
import jax.numpy as jnp
from jax.experimental import pallas as pl
from jax.experimental.pallas import tpu as pltpu

EPS = 1e-5
_VMEM_LIMIT = 32 * 1024 * 1024  # fits every generation incl. v7x (64 MiB physical)


# ---------------------------------------------------------------------------
# In-kernel helpers
# ---------------------------------------------------------------------------
def _conv_taps(prev_row, cur, next_row, i, block_rows, seq_len):
    """Build the fused-tap operand (B, 3C): [h(l-1), h(l), h(l+1)] per row.

    prev_row / next_row are single halo rows taken from the neighbouring tiles;
    sequence boundaries (l == 0 / l == L-1 within each batch element) are zero
    padded, which also neutralizes the clamped halos of the first/last tile.
    """
    B = block_rows
    xm1 = jnp.concatenate([prev_row, cur[:B - 1, :]], axis=0)   # row j -> src row j-1
    xp1 = jnp.concatenate([cur[1:, :], next_row], axis=0)       # row j -> src row j+1
    pos = (i * B + jax.lax.broadcasted_iota(jnp.int32, (B, 1), 0)) % seq_len
    xm1 = jnp.where(pos == 0, 0.0, xm1)               # zero pad at sequence start
    xp1 = jnp.where(pos == seq_len - 1, 0.0, xp1)     # zero pad at sequence end
    return jnp.concatenate([xm1, cur, xp1], axis=-1)  # (B, 3*C)


def _write_stats(stats_ref, y):
    """Per-tile partial batch statistics: [sum(y); sum(y*y)] -> (1, 2, C) block."""
    stats_ref[...] = jnp.concatenate(
        [jnp.sum(y, axis=0, keepdims=True),
         jnp.sum(y * y, axis=0, keepdims=True)], axis=0)[None]


# ---------------------------------------------------------------------------
# Kernels
# ---------------------------------------------------------------------------
def _conv1_stats_kernel(prev_ref, cur_ref, next_ref, w_ref, out_ref, stats_ref,
                        *, seq_len, block_rows, halo_rows):
    i = pl.program_id(0)
    H = halo_rows
    xcat = _conv_taps(prev_ref[H - 1:H, :], cur_ref[...], next_ref[0:1, :],
                      i, block_rows, seq_len)
    y = jnp.dot(xcat, w_ref[...], preferred_element_type=jnp.float32)  # (B, C)
    out_ref[...] = y
    _write_stats(stats_ref, y)


def _bn_relu_conv2_stats_kernel(prev_ref, cur_ref, next_ref, scale_ref, shift_ref,
                                w_ref, out_ref, stats_ref,
                                *, seq_len, block_rows, halo_rows):
    i = pl.program_id(0)
    H = halo_rows
    scale = scale_ref[...]
    shift = shift_ref[...]
    act = lambda t: jnp.maximum(t * scale + shift, 0.0)   # folded BN1 + ReLU
    xcat = _conv_taps(act(prev_ref[H - 1:H, :]), act(cur_ref[...]),
                      act(next_ref[0:1, :]), i, block_rows, seq_len)
    y = jnp.dot(xcat, w_ref[...], preferred_element_type=jnp.float32)  # (B, C)
    out_ref[...] = y
    _write_stats(stats_ref, y)


def _bn2_residual_relu_kernel(y_ref, x_ref, scale_ref, shift_ref, o_ref):
    o_ref[...] = jnp.maximum(
        y_ref[...] * scale_ref[...] + shift_ref[...] + x_ref[...], 0.0)


# ---------------------------------------------------------------------------
# pallas_call wrappers
# ---------------------------------------------------------------------------
def _row_specs(nl, c, block_rows):
    """Main tile, prev/next halo, and broadcast-vector BlockSpecs for (nl, c)."""
    B = block_rows
    T = nl // B
    tile = pl.BlockSpec((B, c), lambda i: (i, 0))
    vec = pl.BlockSpec((1, c), lambda i: (0, 0))
    if T == 1:
        # Single tile: halo rows are never used (sequence boundaries are masked),
        # so just alias the main tile spec.
        return T, tile, tile, tile, vec, B
    # 8-row (sublane-granular) halo blocks instead of full neighbour tiles: the
    # kernel only needs one row from each neighbour, so this cuts conv-input HBM
    # traffic from 3x to ~(1 + 16/B)x.  Clamped at the array ends; the stale
    # clamped rows only ever feed sequence-boundary taps, which are masked.
    hb = B // 8            # number of 8-row blocks per tile
    nhb = nl // 8          # total number of 8-row blocks
    prev = pl.BlockSpec((8, c), lambda i: (jnp.maximum(i * hb - 1, 0), 0))
    nxt = pl.BlockSpec((8, c), lambda i: (jnp.minimum((i + 1) * hb, nhb - 1), 0))
    return T, tile, prev, nxt, vec, 8


def _conv_stats_call(src2d, w_fused, scale_shift, *, seq_len, block_rows):
    nl, c = src2d.shape
    T, tile, prev, nxt, vec, halo = _row_specs(nl, c, block_rows)
    w_spec = pl.BlockSpec((3 * c, c), lambda i: (0, 0))
    stats_spec = pl.BlockSpec((1, 2, c), lambda i: (i, 0, 0))   # per-tile partials

    if scale_shift is None:
        kernel = functools.partial(_conv1_stats_kernel, seq_len=seq_len,
                                   block_rows=block_rows, halo_rows=halo)
        in_specs = [prev, tile, nxt, w_spec]
        args = (src2d, src2d, src2d, w_fused)
    else:
        kernel = functools.partial(_bn_relu_conv2_stats_kernel, seq_len=seq_len,
                                   block_rows=block_rows, halo_rows=halo)
        in_specs = [prev, tile, nxt, vec, vec, w_spec]
        args = (src2d, src2d, src2d, scale_shift[0], scale_shift[1], w_fused)

    flops = 2 * nl * (3 * c) * c                      # fused-tap matmul
    bytes_accessed = 4 * (2 * nl * c + T * 16 * c + 3 * c * c + T * 2 * c + 2 * c)
    return pl.pallas_call(
        kernel,
        grid=(T,),
        in_specs=in_specs,
        out_specs=(tile, stats_spec),
        out_shape=(jax.ShapeDtypeStruct((nl, c), jnp.float32),
                   jax.ShapeDtypeStruct((T, 2, c), jnp.float32)),
        compiler_params=pltpu.CompilerParams(
            dimension_semantics=("parallel",),        # per-tile writes only -> megacore
            vmem_limit_bytes=_VMEM_LIMIT),
        cost_estimate=pl.CostEstimate(flops=flops, transcendentals=0,
                                      bytes_accessed=bytes_accessed),
    )(*args)


def _bn2_residual_call(y2d, x2d, scale, shift, *, block_rows):
    nl, c = y2d.shape
    T, tile, _, _, vec, _ = _row_specs(nl, c, block_rows)
    return pl.pallas_call(
        _bn2_residual_relu_kernel,
        grid=(T,),
        in_specs=[tile, tile, vec, vec],
        out_specs=tile,
        out_shape=jax.ShapeDtypeStruct((nl, c), jnp.float32),
        compiler_params=pltpu.CompilerParams(
            dimension_semantics=("parallel",),        # purely elementwise -> megacore
            vmem_limit_bytes=_VMEM_LIMIT),
        cost_estimate=pl.CostEstimate(flops=4 * nl * c, transcendentals=0,
                                      bytes_accessed=4 * (3 * nl * c + 2 * c)),
    )(y2d, x2d, scale, shift)


def _bn_affine(partial_stats, gamma, beta, count):
    """Fold training-mode BatchNorm into y*scale + shift from per-tile (sum, sumsq)."""
    s = jnp.sum(partial_stats, axis=0)                # (2, C)
    mean = s[0] / count
    var = s[1] / count - mean * mean                  # biased variance, one pass
    scale = gamma * jax.lax.rsqrt(var + EPS)
    shift = beta - mean * scale
    return scale.reshape(1, -1), shift.reshape(1, -1)


def _pick_block_rows(nl, requested=None):
    if requested is not None:
        if nl % requested or requested % 8:
            raise ValueError("block_rows must divide N*L and be a multiple of 8")
        return requested
    if nl % 8:
        return nl                                     # single block == full array
    b = min(512, nl)
    b -= b % 8
    while nl % b:
        b -= 8
    return b


def residual_block(x_ncl, params, *, block_rows=None):
    """ResidualBlock forward (training-mode BatchNorm).  x_ncl: (N, C, L) f32."""
    w1, _b1, g1, be1, w2, _b2, g2, be2 = params       # conv biases cancel under batch-stat BN
    N, C, L = x_ncl.shape
    NL = N * L
    B = _pick_block_rows(NL, block_rows)

    # NCL -> (N*L, C): channels on the lane axis, rows on sublanes.
    x2d = jnp.transpose(x_ncl, (0, 2, 1)).reshape(NL, C).astype(jnp.float32)
    # torch (Cout, Cin, K) -> fused (K*Cin, Cout); tap order [x(l-1), x(l), x(l+1)].
    w1k = jnp.transpose(w1, (2, 1, 0)).reshape(3 * C, C).astype(jnp.float32)
    w2k = jnp.transpose(w2, (2, 1, 0)).reshape(3 * C, C).astype(jnp.float32)

    conv1, stats1 = _conv_stats_call(x2d, w1k, None, seq_len=L, block_rows=B)
    scale1, shift1 = _bn_affine(stats1, g1.astype(jnp.float32),
                                be1.astype(jnp.float32), NL)
    conv2, stats2 = _conv_stats_call(conv1, w2k, (scale1, shift1),
                                     seq_len=L, block_rows=B)
    scale2, shift2 = _bn_affine(stats2, g2.astype(jnp.float32),
                                be2.astype(jnp.float32), NL)
    out2d = _bn2_residual_call(conv2, x2d, scale2, shift2, block_rows=B)

    return jnp.transpose(out2d.reshape(N, L, C), (0, 2, 1))  # back to (N, C, L)


# ---------------------------------------------------------------------------
# Pure-JAX reference (exact PyTorch semantics, incl. conv biases) for validation
# ---------------------------------------------------------------------------
def residual_block_reference(x, params):
    w1, b1, g1, be1, w2, b2, g2, be2 = params

    def conv(x, w, b):
        y = jax.lax.conv_general_dilated(
            x, w, window_strides=(1,), padding=[(1, 1)],
            dimension_numbers=("NCH", "OIH", "NCH"))
        return y + b[None, :, None]

    def bn(y, gamma, beta):
        mean = jnp.mean(y, axis=(0, 2), keepdims=True)
        var = jnp.mean((y - mean) ** 2, axis=(0, 2), keepdims=True)
        yhat = (y - mean) / jnp.sqrt(var + EPS)
        return yhat * gamma[None, :, None] + beta[None, :, None]

    out = jnp.maximum(bn(conv(x, w1, b1), g1, be1), 0.0)
    out = bn(conv(out, w2, b2), g2, be2) + x
    return jnp.maximum(out, 0.0)


# ---------------------------------------------------------------------------
if __name__ == "__main__":
    N, C, L = 2, 4, 16  # batch, channels, sequence length

    key = jax.random.PRNGKey(0)
    ks = jax.random.split(key, 9)
    x = jax.random.normal(ks[0], (N, C, L), dtype=jnp.float32)

    w1 = 0.2 * jax.random.normal(ks[1], (C, C, 3), dtype=jnp.float32)
    b1 = 0.1 * jax.random.normal(ks[2], (C,), dtype=jnp.float32)
    w2 = 0.2 * jax.random.normal(ks[3], (C, C, 3), dtype=jnp.float32)
    b2 = 0.1 * jax.random.normal(ks[4], (C,), dtype=jnp.float32)
    g1 = 1.0 + 0.1 * jax.random.normal(ks[5], (C,), dtype=jnp.float32)
    be1 = 0.1 * jax.random.normal(ks[6], (C,), dtype=jnp.float32)
    g2 = 1.0 + 0.1 * jax.random.normal(ks[7], (C,), dtype=jnp.float32)
    be2 = 0.1 * jax.random.normal(ks[8], (C,), dtype=jnp.float32)

    params = (w1, b1, g1, be1, w2, b2, g2, be2)

    ref = jax.block_until_ready(residual_block_reference(x, params))

    # block_rows=8 -> a 4-step row grid, exercising the cross-tile 8-row halo path.
    out_tiled = jax.block_until_ready(residual_block(x, params, block_rows=8))
    # default block_rows -> single-tile path (halo specs aliased to the main tile).
    out_single = jax.block_until_ready(residual_block(x, params))

    for out in (out_tiled, out_single):
        assert out.shape == (N, C, L)
        max_diff = float(jnp.max(jnp.abs(out - ref)))
        assert jnp.allclose(out, ref, rtol=2e-4, atol=2e-4), f"max abs diff = {max_diff}"

    print("KERNEL_OK")
</pallas_src>

<mosaic_0001>
module attributes {stable_mosaic.version = 11 : i64} {
  func.func @_conv1_stats_kernel(%arg0: i32, %arg1: memref<8x4xf32, #tpu.memory_space<vmem>>, %arg2: memref<8x4xf32, #tpu.memory_space<vmem>>, %arg3: memref<8x4xf32, #tpu.memory_space<vmem>>, %arg4: memref<12x4xf32, #tpu.memory_space<vmem>>, %arg5: memref<8x4xf32, #tpu.memory_space<vmem>>, %arg6: memref<1x2x4xf32, #tpu.memory_space<vmem>>) attributes {dimension_semantics = [#tpu.dimension_semantics<parallel>], iteration_bounds = array<i64: 4>, scalar_prefetch = 0 : i64, scratch_operands = 0 : i64, tpu.core_type = #tpu.core_type<tc>, window_params = [{transform_indices = @transform_0, window_bounds = array<i64: 8, 4>}, {transform_indices = @transform_1, window_bounds = array<i64: 8, 4>}, {transform_indices = @transform_2, window_bounds = array<i64: 8, 4>}, {pipeline_mode = #tpu.pipeline_mode<synchronous>, transform_indices = @transform_3, window_bounds = array<i64: 12, 4>}, {transform_indices = @transform_4, window_bounds = array<i64: 8, 4>}, {transform_indices = @transform_5, window_bounds = array<i64: 1, 2, 4>}]} {
    %c7 = arith.constant 7 : index
    %c0 = arith.constant 0 : index
    %0 = vector.load %arg1[%c7, %c0] : memref<8x4xf32, #tpu.memory_space<vmem>>, vector<1x4xf32>
    %c0_0 = arith.constant 0 : index
    %c0_1 = arith.constant 0 : index
    %1 = vector.load %arg2[%c0_0, %c0_1] : memref<8x4xf32, #tpu.memory_space<vmem>>, vector<8x4xf32>
    %c0_2 = arith.constant 0 : index
    %c0_3 = arith.constant 0 : index
    %2 = vector.load %arg3[%c0_2, %c0_3] : memref<8x4xf32, #tpu.memory_space<vmem>>, vector<1x4xf32>
    %3 = vector.extract_strided_slice %1 {offsets = [0, 0], sizes = [7, 4], strides = [1, 1]} : vector<8x4xf32> to vector<7x4xf32>
    %4 = tpu.concatenate %0, %3 in 0 : vector<1x4xf32>, vector<7x4xf32> -> vector<8x4xf32>
    %5 = vector.extract_strided_slice %1 {offsets = [1, 0], sizes = [7, 4], strides = [1, 1]} : vector<8x4xf32> to vector<7x4xf32>
    %6 = tpu.concatenate %5, %2 in 0 : vector<7x4xf32>, vector<1x4xf32> -> vector<8x4xf32>
    %c8_i32 = arith.constant 8 : i32
    %7 = arith.muli %arg0, %c8_i32 : i32
    %8 = tpu.iota {dimensions = array<i32: 0>} : vector<8x1xi32>
    %9 = vector.broadcast %7 : i32 to vector<8x1xi32>
    %10 = arith.addi %9, %8 : vector<8x1xi32>
    %c16_i32 = arith.constant 16 : i32
    %c0_i32 = arith.constant 0 : i32
    %11 = arith.cmpi eq, %c16_i32, %c0_i32 : i32
    %c1_i32 = arith.constant 1 : i32
    %12 = arith.select %11, %c1_i32, %c16_i32 : i32
    %13 = vector.broadcast %12 : i32 to vector<8x1xi32>
    %14 = arith.remsi %10, %13 : vector<8x1xi32>
    %c0_i32_4 = arith.constant 0 : i32
    %15 = vector.broadcast %c0_i32_4 : i32 to vector<8x1xi32>
    %16 = arith.cmpi ne, %14, %15 : vector<8x1xi32>
    %c0_i32_5 = arith.constant 0 : i32
    %17 = vector.broadcast %c0_i32_5 : i32 to vector<8x1xi32>
    %18 = arith.cmpi slt, %14, %17 : vector<8x1xi32>
    %c0_i32_6 = arith.constant 0 : i32
    %19 = arith.cmpi slt, %12, %c0_i32_6 : i32
    %20 = vector.broadcast %19 : i1 to vector<8x1xi1>
    %21 = vector.broadcast %20 : vector<8x1xi1> to vector<8x1xi1>
    %22 = arith.xori %18, %21 : vector<8x1xi1>
    %23 = arith.andi %22, %16 : vector<8x1xi1>
    %24 = vector.broadcast %12 : i32 to vector<8x1xi32>
    %25 = arith.addi %14, %24 : vector<8x1xi32>
    %26 = arith.select %23, %25, %14 : vector<8x1xi1>, vector<8x1xi32>
    %c0_i32_7 = arith.constant 0 : i32
    %27 = vector.broadcast %c0_i32_7 : i32 to vector<8x1xi32>
    %28 = arith.cmpi eq, %26, %27 : vector<8x1xi32>
    %cst = arith.constant 0.000000e+00 : f32
    %29 = vector.shape_cast %28 : vector<8x1xi1> to vector<8x1xi1>
    %30 = vector.broadcast %29 : vector<8x1xi1> to vector<8x4xi1>
    %31 = vector.broadcast %cst : f32 to vector<8x4xf32>
    %32 = arith.select %30, %31, %4 : vector<8x4xi1>, vector<8x4xf32>
    %c15_i32 = arith.constant 15 : i32
    %33 = vector.broadcast %c15_i32 : i32 to vector<8x1xi32>
    %34 = arith.cmpi eq, %26, %33 : vector<8x1xi32>
    %cst_8 = arith.constant 0.000000e+00 : f32
    %35 = vector.shape_cast %34 : vector<8x1xi1> to vector<8x1xi1>
    %36 = vector.broadcast %35 : vector<8x1xi1> to vector<8x4xi1>
    %37 = vector.broadcast %cst_8 : f32 to vector<8x4xf32>
    %38 = arith.select %36, %37, %6 : vector<8x4xi1>, vector<8x4xf32>
    %39 = tpu.concatenate %32, %1, %38 in 1 : vector<8x4xf32>, vector<8x4xf32>, vector<8x4xf32> -> vector<8x12xf32>
    %c0_9 = arith.constant 0 : index
    %c0_10 = arith.constant 0 : index
    %40 = vector.load %arg4[%c0_9, %c0_10] : memref<12x4xf32, #tpu.memory_space<vmem>>, vector<12x4xf32>
    %cst_11 = arith.constant dense<0.000000e+00> : vector<8x4xf32>
    %41 = tpu.matmul %39, %40, %cst_11 {dimension_numbers = #tpu.dot_dimension_numbers<[1], [0], [0], [1], [0, 0, 1, 1], [], []>} : vector<8x12xf32>, vector<12x4xf32>, vector<8x4xf32> -> vector<8x4xf32>
    %c0_12 = arith.constant 0 : index
    %c0_13 = arith.constant 0 : index
    %42 = vector.load %arg5[%c0_12, %c0_13] : memref<8x4xf32, #tpu.memory_space<vmem>>, vector<8x4xf32>
    tpu.vector_store %arg5[%c0_12, %c0_13], %41 {strides = array<i32>} : memref<8x4xf32, #tpu.memory_space<vmem>>, vector<8x4xf32>,
    %cst_14 = arith.constant dense<0.000000e+00> : vector<4xf32>
    %43 = vector.multi_reduction <add>, %41, %cst_14 [0] : vector<8x4xf32> to vector<4xf32>
    %44 = vector.shape_cast %43 : vector<4xf32> to vector<1x4xf32>
    %45 = arith.mulf %41, %41 : vector<8x4xf32>
    %cst_15 = arith.constant dense<0.000000e+00> : vector<4xf32>
    %46 = vector.multi_reduction <add>, %45, %cst_15 [0] : vector<8x4xf32> to vector<4xf32>
    %47 = vector.shape_cast %46 : vector<4xf32> to vector<1x4xf32>
    %48 = tpu.concatenate %44, %47 in 0 : vector<1x4xf32>, vector<1x4xf32> -> vector<2x4xf32>
    %49 = vector.shape_cast %48 : vector<2x4xf32> to vector<1x2x4xf32>
    %c0_16 = arith.constant 0 : index
    %c0_17 = arith.constant 0 : index
    %c0_18 = arith.constant 0 : index
    %50 = vector.load %arg6[%c0_16, %c0_17, %c0_18] : memref<1x2x4xf32, #tpu.memory_space<vmem>>, vector<1x2x4xf32>
    tpu.vector_store %arg6[%c0_16, %c0_17, %c0_18], %49 {strides = array<i32>} : memref<1x2x4xf32, #tpu.memory_space<vmem>>, vector<1x2x4xf32>,
    return
  }
  func.func @transform_0(%arg0: i32) -> (i32, i32) {
    %c1_i32 = arith.constant 1 : i32
    %0 = arith.muli %arg0, %c1_i32 : i32
    %c1_i32_0 = arith.constant 1 : i32
    %1 = arith.subi %0, %c1_i32_0 : i32
    %c0_i32 = arith.constant 0 : i32
    %2 = arith.maxsi %1, %c0_i32 : i32
    %c0_i32_1 = arith.constant 0 : i32
    %c0_i32_2 = arith.constant 0 : i32
    return %2, %c0_i32_1 : i32, i32
  }
  func.func @transform_1(%arg0: i32) -> (i32, i32) {
    %c0_i32 = arith.constant 0 : i32
    %c0_i32_0 = arith.constant 0 : i32
    return %arg0, %c0_i32 : i32, i32
  }
  func.func @transform_2(%arg0: i32) -> (i32, i32) {
    %c1_i32 = arith.constant 1 : i32
    %0 = arith.addi %arg0, %c1_i32 : i32
    %c1_i32_0 = arith.constant 1 : i32
    %1 = arith.muli %0, %c1_i32_0 : i32
    %c3_i32 = arith.constant 3 : i32
    %2 = arith.minsi %1, %c3_i32 : i32
    %c0_i32 = arith.constant 0 : i32
    %c0_i32_1 = arith.constant 0 : i32
    return %2, %c0_i32 : i32, i32
  }
  func.func @transform_3(%arg0: i32) -> (i32, i32) {
    %c0_i32 = arith.constant 0 : i32
    %c0_i32_0 = arith.constant 0 : i32
    %c0_i32_1 = arith.constant 0 : i32
    return %c0_i32, %c0_i32_0 : i32, i32
  }
  func.func @transform_4(%arg0: i32) -> (i32, i32) {
    %c0_i32 = arith.constant 0 : i32
    %c0_i32_0 = arith.constant 0 : i32
    return %arg0, %c0_i32 : i32, i32
  }
  func.func @transform_5(%arg0: i32) -> (i32, i32, i32) {
    %c0_i32 = arith.constant 0 : i32
    %c0_i32_0 = arith.constant 0 : i32
    %c0_i32_1 = arith.constant 0 : i32
    return %arg0, %c0_i32, %c0_i32_0 : i32, i32, i32
  }
}

</mosaic_0001>

<bundles_post_ra>
// kernel: tpu_custom_call.1
= control target key start
LH: loop header
LB: loop body
LE: loop exit
PB: predicated region body
PF: predicated region fallthrough
CT: control target
= control target key end

     0   :  { %11 = vsyncpa [#allocation3], 0  ;;  %s815_s0 = inlined_call_operand.vmem [shape: f32[32,4], index: 0, kind: input, shape index: {}]   ;;  %s816_s1 = inlined_call_operand.vmem [shape: f32[32,4], index: 1, kind: input, shape index: {}]   ;;  %s817_s2 = inlined_call_operand.vmem [shape: f32[32,4], index: 2, kind: input, shape index: {}]   ;;  %s818_s3 = inlined_call_operand.vmem [shape: f32[12,4], index: 3, kind: input, shape index: {}]   ;;  %s819_s4 = inlined_call_operand.vmem [shape: f32[32,4], index: 4, kind: output, shape index: {0}]   ;;  %s820_s5 = inlined_call_operand.hbm [shape: f32[4,2,4], index: 5, kind: output, shape index: {1}]  }
   0x1   :  { %13 = vsyncpa [#allocation3 + $0x1], 0  ;;  %s703_s18 = smov 0   ;;  %s705_s19 = smov 0  }
   0x2   :  { %s707_s20 = smov 0   ;;  %s709_s21 = smov 0  }
   0x3 LB: > { %s724_s22 = sadd.s32 4294967295, %s669_s21   ;;  %s537_s23 = sadd.s32 4294967294, %s669_s21   ;;  %s669_s21 = sphi %s709_s21, %s826_s21   ;;  %s665_s20 = sphi %s707_s20, %s825_s20   ;;  %s661_s19 = sphi %s705_s19, %s824_s19   ;;  %s657_s18 = sphi %s703_s18, %s823_s18  }
   0x4   : > { %s728_s24 = sadd.s32 1, %s669_s21   ;;  %s163_s25 = sadd.s32 1, %s665_s20 }
   0x5   : > { %s160_s26 = ssub.s32 %s669_s21, %s728_s24  ;;  %p173_p0 = scmp.ne.s32.totalorder %s665_s20, %s661_s19 }
   0x6   : > { %p161_p1 = scmp.eq.s32.totalorder %s160_s26, 0  ;;  %p174_p2 = scmp.eq.s32.totalorder %s724_s22, 3 }
   0x7   : > { %p179_p3 = scmp.ne.s32.totalorder %s661_s19, %s657_s18  ;;  %p180_p4 = scmp.eq.s32.totalorder %s537_s23, 3 }
   0x8   : > { %s739_s27 = scalar_select %p161_p1, %s665_s20, %s163_s25  }
   0x9   : > { %p741_p5 = por %p174_p2, %p173_p0  ;;  %p745_p6 = por %p180_p4, %p179_p3 }
   0xa   : > { %p542_p7 = scmp.ge.s32.totalorder %s669_s21, 1  ;;  %p234_p8 = scmp.lt.s32.totalorder %s669_s21, 5 }
   0xc   : > { %p235_p9 = pnand %p542_p7, %p234_p8 }
   0xd   : > { %p289_p10 = scmp.lt.s32.totalorder (!%p235_p9), %s724_s22, 3  ;;  %s293_s30 = sadd.s32 (!%p235_p9), 1, %s724_s22 }
   0xe   : > { %238 = sbr.rel (%p235_p9) target bundleno = 299 (0x12b), region = 36  ;;  %s557_s6 = sshll.u32 (!%p235_p9), %s724_s22, 3 }
   0xf   : > { %p294_p11 = scmp.lt.s32.totalorder (!%p235_p9), %s293_s30, 3  ;;  %s671_s12 = smov (!%p235_p9), 4  }
  0x10   : > { %s672_s17 = smov (!%p235_p9), 8   ;;  %s544_s23 = sadd.s32 (!%p235_p9), 4294967295, %s724_s22 }
  0x11   : > { %p280_p12 = scmp.gt.s32.totalorder (!%p235_p9), %s544_s23, 0  ;;  %p545_p13 = scmp.lt.s32.totalorder (!%p235_p9), %s544_s23, 3 }
  0x12   : > { %s627_s14 = scalar_lea.hbm (!%p235_p9), %s820_s5, 8 }
  0x13   : > { %v323_v0 = vlaneseq  ;;  %s755_s7 = scalar_select %p289_p10, %s724_s22, 3  ;;  %v325_v2 = vstv %s557_s6  ;;  %vm320_vm1 = vcmask 1046528   ;;  %vm313_vm6 = vcmask 1040384   ;;  %v359_v20 = vld [vmem:[%s818_s3 + $0x8] sm:$0xf]  ;;  %v358_v22 = vld [vmem:[%s818_s3] sm:$0xff] }
  0x14   : > { %s828_s30 = smov (!%p294_p11, %s293_s30), 3  ;;  %vm364_vm8 = vcmask 1043456   ;;  %vm354_vm9 = vcmask 31744   ;;  %vm356_vm10 = vcmask 64512   ;;  %vm360_vm11 = vcmask 97280  }
  0x15   : > { %v324_v1 = vshrl.u32 %v323_v0, 7  ;;  %s551_s8 = sshll.u32 %s755_s7, 3  ;;  %s830_s30 = smov (!%p294_p11, %s828_s30), 3  ;;  %558 = vmatpush.msk.msra.mxu0 %vm364_vm8, %v359_v20  ;;  %vm405_vm12 = vcmask 25600  }
  0x16   : > { %s292_s11 = scalar_lea.vmem %s816_s1, %s551_s8  ;;  %s555_s13 = sshll.u32 %s830_s30, 3 }
  0x17   : > { %v326_v3 = vadd.s32 %v325_v2, %v324_v1  ;;  %v308_v4 = vld [vmem:[%s292_s11] sm:$0xff]  ;;  %s299_s16 = scalar_lea.vmem %s817_s2, %s555_s13  ;;  %383 = vmatpush.msra.mxu0 %v358_v22 }
  0x18   : > { %347 = vrot.lane.b32.xlu0 %v308_v4, %s671_s12  ;;  %v315_v8 = vrot.slane %v308_v4, 1  ;;  %v309_v10 = vld [vmem:[%s299_s16] sm:$0x1]  ;;  %s281_s25 = scalar_select %p280_p12, %s544_s23, 0  ;;  %v311_v17 = vrot.slane %v308_v4, 7 }
  0x19   : > { %vm327_vm0 = vcmp.lt.s32.totalorder %v326_v3, 0  ;;  %v328_v5 = vsub.s32 0, %v326_v3  ;;  %v318_v11 = vrot.slane %v309_v10, 1  ;;  %s306_s16 = scalar_lea.vmem %s819_s4, %s551_s8 }
  0x1a   : > { %s832_s25 = smov (!%p545_p13, %s281_s25), 3 }
  0x1b   : > { %v329_v6 = vsel %vm327_vm0, %v328_v5, %v326_v3  ;;  %v321_v14 = vsel %vm320_vm1, %v315_v8, %v318_v11  ;;  %s550_s26 = sshll.u32 %s832_s25, 3  ;;  %s561_s25 = sshll.u32 %s724_s22, 1 }
  0x1c   : > { %v331_v7 = vand.u32 15, %v329_v6  ;;  %s285_s9 = scalar_lea.vmem %s815_s0, %s550_s26  ;;  %s425_s30 = scalar_lea.hbm %s820_s5, %s561_s25 }
  0x1d   : > { %v307_v18 = vld [vmem:[%s285_s9 + $0x7] sm:$0x1]  ;;  %s429_s9 = sshll.u32 %s425_s30, 4  ;;  %s430_s9 = int_to_ptr.hbm [resolvable:$true] %s429_s9 }
  0x1e   : > { %v332_v9 = vsub.s32 0, %v331_v7  ;;  %v314_v19 = vsel %vm313_vm6, %v307_v18, %v311_v17  ;;  %s621_s10 = sshra.s32 %s430_s9, 4  ;;  %s622_s10 = int_to_ptr.hbm [resolvable:$true] %s621_s10 }
  0x1f   : > { %s623_s11 = scalar_lea.hbm %s622_s10, 2  ;;  %p628_p3 = scmp.lt.s32.totalorder %s622_s10, %s820_s5 }
  0x20   : > { %v333_v12 = vsel %vm327_vm0, %v332_v9, %v331_v7  ;;  %p624_p0 = scmp.ne.s32.totalorder %s622_s10, %s623_s11  ;;  %p629_p4 = scmp.lt.s32.totalorder %s627_s14, %s623_s11 }
  0x21   : > { %vm334_vm2 = vcmp.ne.s32.totalorder %v333_v12, 0  ;;  %vm335_vm3 = vcmp.lt.s32.totalorder %v333_v12, 0  ;;  %v337_v13 = vadd.s32 16, %v333_v12 }
  0x22   : > { %vm336_vm4 = vmand %vm335_vm3, %vm334_vm2  ;;  %p625_p1 = pnand %p624_p0, %p741_p5  ;;  %p630_p7 = por %p629_p4, %p628_p3 }
  0x23   : > { %v338_v15 = vsel %vm336_vm4, %v337_v13, %v333_v12 }
  0x24   : > { %vm343_vm5 = vcmp.eq.s32.totalorder %v338_v15, 15  ;;  %vm339_vm7 = vcmp.eq.s32.totalorder %v338_v15, 0  ;;  %p626_p2 = pneg %p625_p1 }
  0x25   : > { %v346_v16 = vsel %vm343_vm5, 0.0, %v321_v14  ;;  %v342_v21 = vsel %vm339_vm7, 0.0, %v314_v19 }
  0x26   : > { %351 = vrot.lane.b32.xlu0 %v346_v16, %s672_s17  ;;  %s276_s17 = sand.u32 1, %s661_s19   ;;  %p631_p8 = pnand %p630_p7, %p626_p2 }
  0x27   : > { %s543_s23 = sshll.u32 %s276_s17, 1  ;;  %s412_s22 = scalar_lea.sflag [#allocation3], %s276_s17 }
  0x28   : > { %s278_s8 = scalar_lea.vmem [#allocation2], %s543_s23 }
  0x29   : > { %s427_s6 = sshll.u32 %s278_s8, 4  ;;  %s428_s6 = int_to_ptr.vmem [resolvable:$true] %s427_s6 }
  0x8a   : > { %v348_v23 = vpop.permute.xlu0 %347 }
  0x8b   : > { %v355_v24 = vsel %vm354_vm9, %v342_v21, %v348_v23 }
  0x98   : > { %v352_v25 = vpop.permute.xlu0 %351 }
  0x99   : > { %v357_v26 = vsel %vm356_vm10, %v355_v24, %v352_v25 }
  0x9a   : > { %559 = vmatmul.msk.f32.vlgmr.msra.gmra.mxu0 %vm360_vm11, %v357_v26 }
 0x117   : > { %v385_v27 = vpop.f32.mrf.mxu0 }
 0x118   : > { %388 = vst.msk [vmem:[%s306_s16] sm:$0xff] %vm354_vm9, %v385_v27  ;;  %v389_v28 = vsel %vm354_vm9, %v385_v27, 0.0  ;;  %v396_v29 = vmul.f32 %v385_v27, %v385_v27 }
 0x119   : > { %v390_v30 = vrot.slane %v389_v28, 4 }
 0x11a   : > { %v397_v31 = vsel %vm354_vm9, %v396_v29, 0.0 }
 0x11b   : > { %v391_v32 = vadd.f32 %v390_v30, %v389_v28  ;;  %v398_v33 = vrot.slane %v397_v31, 4 }
 0x11d   : > { %v392_v34 = vrot.slane %v391_v32, 2  ;;  %v399_v35 = vadd.f32 %v398_v33, %v397_v31 }
 0x11f   : > { %v393_v36 = vadd.f32 %v392_v34, %v391_v32  ;;  %v400_v37 = vrot.slane %v399_v35, 2 }
 0x121   : > { %v394_v38 = vrot.slane %v393_v36, 1  ;;  %v401_v39 = vadd.f32 %v400_v37, %v399_v35 }
 0x123   : > { %v402_v40 = vrot.slane %v401_v39, 1  ;;  %v395_v41 = vadd.f32 %v394_v38, %v393_v36 }
 0x125   : > { %v403_v42 = vadd.f32 %v402_v40, %v401_v39 }
 0x127   : > { %v404_v43 = vsel %vm313_vm6, %v395_v41, %v403_v42 }
 0x128   : > { %406 = vst.msk [vmem:[%s278_s8] sm:$0x3] %vm405_vm12, %v404_v43 }
 0x129   : > { %634 = shalt.err (!%p631_p8)
}
 0x12a   : > { %566 = dma.vmem_to_hbm [thread:$0]  (%p741_p5), %s428_s6, 32, %s430_s9, %s412_s22  }
 0x12b PF: > { %p572_p9 = scmp.ge.s32.totalorder %s669_s21, 2  ;;  %s448_s17 = sand.u32 1, %s657_s18  }
 0x12c   : > { %s449_s23 = scalar_lea.sflag [#allocation3], %s448_s17 }
 0x12d   : > { %p569_p10 = pnand %p572_p9, %p745_p6 }
 0x12f   : > { %p570_p11 = pneg %p569_p10 }
 0x131   : > { %652 = dma.done.wait (%p570_p11), %s449_s23, 32  }
 0x132   : > { %654 = vsyncadd (%p570_p11), %s449_s23, 4294967264  ;;  %p16_p12 = scmp.ge.s32.totalorder %s728_s24, 6   ;;  %s823_s18 = smov %s661_s19 }
 0x133   : > { %s824_s19 = smov %s665_s20  ;;  %s825_s20 = smov %s739_s27 }
 0x134   : > { %s826_s21 = smov %s728_s24  ;;  %18 = sbr.rel (!%p16_p12) target bundleno = 3 (0x3), region = 89 }
 0x139   :  { %455 = vsyncpa [#allocation3], 1 }
 0x13a   :  { %457 = vsyncpa [#allocation3 + $0x1], 1 }

</bundles_post_ra>
